<compile_context>
chip_gen: v7x
topology: tpu7x:2x2x1
jax: 0.10.0
libtpu: 0.0.40
codegen_flags: <defaults>
</compile_context>

<pallas_src>
import functools

import numpy as np
import jax
import jax.numpy as jnp
from jax.experimental import pallas as pl
from jax.experimental.pallas import tpu as pltpu


def _round_up(x, m):
    return (x + m - 1) // m * m


# ---------------------------------------------------------------------------
# Kernel 1: fused QKV projection (+ bias, + q scale, + RoPE on q and k).
# ---------------------------------------------------------------------------
def _qkv_rope_kernel(x_ref, w_ref, b_ref, cos_ref, sin_ref,
                     q_ref, k_ref, v_ref, acc_ref, *, E, KV):
    kc = pl.program_id(1)                      # contraction-tile index (last grid axis)

    @pl.when(kc == 0)
    def _():
        acc_ref[...] = jnp.zeros_like(acc_ref)

    # One wide MXU matmul per step; weights stream through double-buffered VMEM tiles.
    acc_ref[...] += jnp.dot(x_ref[...], w_ref[...],
                            preferred_element_type=jnp.float32)

    @pl.when(kc == pl.num_programs(1) - 1)
    def _():
        qkv = acc_ref[...] + b_ref[...]        # (tm, E+2*KV) f32, bias broadcast
        cos = cos_ref[...]                     # (tm, E) f32, permuted half-head layout
        sin = sin_ref[...]

        def rope(t):                           # rotate_half in the permuted layout
            half = t.shape[-1] // 2
            rot = jnp.concatenate([-t[:, half:], t[:, :half]], axis=-1)
            return t * cos + rot * sin

        q_ref[...] = rope(qkv[:, :E]).astype(q_ref.dtype)
        k_ref[...] = rope(qkv[:, E:E + KV]).astype(k_ref.dtype)
        v_ref[...] = qkv[:, E + KV:].astype(v_ref.dtype)


# ---------------------------------------------------------------------------
# Kernel 2: flash-style attention over the full embedding + fused o_proj.
# ---------------------------------------------------------------------------
def _attn_oproj_kernel(q_ref, k_ref, v_ref, wo_ref, o_ref, m_sc, l_sc, acc_sc):
    ki = pl.program_id(2)                      # key-tile index (last grid axis)

    @pl.when(ki == 0)
    def _():
        m_sc[...] = jnp.full(m_sc.shape, -jnp.inf, dtype=m_sc.dtype)
        l_sc[...] = jnp.zeros_like(l_sc)
        acc_sc[...] = jnp.zeros_like(acc_sc)

    q = q_ref[...]                             # (tq, E)
    k = k_ref[...]                             # (tkv, E)
    s = jax.lax.dot_general(q, k, (((1,), (1,)), ((), ())),
                            preferred_element_type=jnp.float32)   # q @ k^T -> (tq, tkv)

    m_prev = m_sc[...]
    m_new = jnp.maximum(m_prev, jnp.max(s, axis=-1, keepdims=True))
    alpha = jnp.exp(m_prev - m_new)
    p = jnp.exp(s - m_new)
    l_sc[...] = alpha * l_sc[...] + jnp.sum(p, axis=-1, keepdims=True)
    acc_sc[...] = alpha * acc_sc[...] + jnp.dot(
        p.astype(v_ref.dtype), v_ref[...], preferred_element_type=jnp.float32)
    m_sc[...] = m_new

    @pl.when(ki == pl.num_programs(2) - 1)
    def _():
        attn = acc_sc[...] / l_sc[...]
        # o_proj fused here.  For production embed_dim, run o_proj as a separate
        # K-tiled matmul kernel instead (a double-buffered full wo stresses v7x VMEM).
        o_ref[...] = jnp.dot(attn.astype(wo_ref.dtype), wo_ref[...],
                             preferred_element_type=jnp.float32).astype(o_ref.dtype)


# ---------------------------------------------------------------------------
# Host-side one-time weight preparation (hoisted out of the per-call path).
# ---------------------------------------------------------------------------
def prepare_qwen2_attention_params(wq, bq, wkv, bkv, wo, *, num_attn_heads,
                                   num_kv_heads, param_dtype=None):
    """Torch-layout weights in, packed MXU-friendly weights out (done once at load)."""
    E = wq.shape[0]
    hd = E // num_attn_heads
    KV = num_kv_heads * hd
    assert hd % 2 == 0
    assert KV == E, "q @ k^T in this module requires num_kv_heads*head_dim == embed_dim"
    scale = hd ** (-0.5)
    if param_dtype is None:
        param_dtype = jnp.asarray(wq).dtype

    # Permutation grouping per-head [first half | second half] across heads.
    def half_head_perm(n_heads):
        h = np.arange(n_heads)[:, None]
        j = np.arange(hd // 2)[None, :]
        first = (h * hd + j).reshape(-1)
        second = (h * hd + hd // 2 + j).reshape(-1)
        return np.concatenate([first, second])

    perm_q = half_head_perm(num_attn_heads)
    perm_k = half_head_perm(num_kv_heads)

    wq_t = jnp.asarray(wq).T[:, perm_q] * scale          # (E, E), q scale folded in
    bq_p = jnp.asarray(bq)[perm_q] * scale
    wkv_t = jnp.asarray(wkv).T                           # (E, 2*KV)
    wk_t = wkv_t[:, :KV][:, perm_k]
    wv_t = wkv_t[:, KV:]
    bk_p = jnp.asarray(bkv)[:KV][perm_k]
    bv = jnp.asarray(bkv)[KV:]

    wqkv = jnp.concatenate([wq_t, wk_t, wv_t], axis=1).astype(param_dtype)  # (E, E+2KV)
    bqkv = jnp.concatenate([bq_p, bk_p, bv])[None, :].astype(jnp.float32)   # (1, E+2KV)
    wo_t = jnp.asarray(wo).T.astype(param_dtype)                            # (E, E)

    return dict(wqkv=wqkv, bqkv=bqkv, wo_t=wo_t, embed_dim=E, head_dim=hd,
                kv_dim=KV, num_attn_heads=num_attn_heads, num_kv_heads=num_kv_heads)


def _rope_tables(seq_len, num_heads, head_dim, base=10000.0):
    """cos/sin tables in the permuted half-head feature layout, shape (S, E)."""
    inv_freq = 1.0 / (base ** (jnp.arange(0, head_dim, 2, dtype=jnp.float32) / head_dim))
    pos = jnp.arange(seq_len, dtype=jnp.float32)
    freqs = pos[:, None] * inv_freq[None, :]                       # (S, hd/2)
    cos = jnp.tile(jnp.cos(freqs), (1, 2 * num_heads))             # (S, E)
    sin = jnp.tile(jnp.sin(freqs), (1, 2 * num_heads))
    return cos, sin


# ---------------------------------------------------------------------------
# Forward wrapper.
# ---------------------------------------------------------------------------
def qwen2_attention(x, params, *, rope_base=10000.0,
                    tm=256, tk_contract=512, tq=256, tkv=256):
    # TODO(synk): cache=True / explicit `position` (KV-cache decode) path of the
    # position_encoder is not implemented; positions are assumed to be arange(S).
    E = params["embed_dim"]
    KV = params["kv_dim"]
    H = params["num_attn_heads"]
    hd = params["head_dim"]
    wqkv, bqkv, wo_t = params["wqkv"], params["bqkv"], params["wo_t"]
    N = E + 2 * KV

    B, S, _ = x.shape
    M = B * S
    x2d = x.reshape(M, E)

    cos, sin = _rope_tables(S, H, hd, rope_base)        # (S, E) f32 each
    cos2d = jnp.tile(cos, (B, 1))
    sin2d = jnp.tile(sin, (B, 1))

    # --- row / contraction tiling for the fused QKV projection -------------
    tm_eff = min(tm, _round_up(M, 8))
    M_pad = _round_up(M, tm_eff)
    if M_pad != M:
        pad = M_pad - M
        x2d = jnp.pad(x2d, ((0, pad), (0, 0)))
        cos2d = jnp.pad(cos2d, ((0, pad), (0, 0)))
        sin2d = jnp.pad(sin2d, ((0, pad), (0, 0)))
    tk_eff = min(tk_contract, E)
    if E % tk_eff != 0:
        tk_eff = E

    qkv_kernel = functools.partial(_qkv_rope_kernel, E=E, KV=KV)
    qkv_bytes = int(x2d.size * x2d.dtype.itemsize
                    + (M_pad // tm_eff) * wqkv.size * wqkv.dtype.itemsize
                    + M_pad * N * x.dtype.itemsize)
    q2d, k2d, v2d = pl.pallas_call(
        qkv_kernel,
        out_shape=(
            jax.ShapeDtypeStruct((M_pad, E), x.dtype),
            jax.ShapeDtypeStruct((M_pad, KV), x.dtype),
            jax.ShapeDtypeStruct((M_pad, KV), x.dtype),
        ),
        grid_spec=pltpu.PrefetchScalarGridSpec(
            num_scalar_prefetch=0,
            grid=(M_pad // tm_eff, E // tk_eff),
            in_specs=[
                pl.BlockSpec((tm_eff, tk_eff), lambda i, kc: (i, kc)),  # x rows
                pl.BlockSpec((tk_eff, N), lambda i, kc: (kc, 0)),       # packed qkv weight
                pl.BlockSpec((1, N), lambda i, kc: (0, 0)),             # packed bias (f32)
                pl.BlockSpec((tm_eff, E), lambda i, kc: (i, 0)),        # cos
                pl.BlockSpec((tm_eff, E), lambda i, kc: (i, 0)),        # sin
            ],
            out_specs=[
                pl.BlockSpec((tm_eff, E), lambda i, kc: (i, 0)),        # q (scaled+RoPE)
                pl.BlockSpec((tm_eff, KV), lambda i, kc: (i, 0)),       # k (RoPE)
                pl.BlockSpec((tm_eff, KV), lambda i, kc: (i, 0)),       # v
            ],
            scratch_shapes=[pltpu.VMEM((tm_eff, N), jnp.float32)],
        ),
        compiler_params=pltpu.CompilerParams(
            dimension_semantics=("parallel", "arbitrary"),
            vmem_limit_bytes=64 * 1024 * 1024),
        cost_estimate=pl.CostEstimate(
            flops=int(2 * M_pad * E * N), transcendentals=0,
            bytes_accessed=qkv_bytes),
    )(x2d, wqkv, bqkv, cos2d, sin2d)

    q = q2d[:M].reshape(B, S, E)
    k = k2d[:M].reshape(B, S, KV)
    v = v2d[:M].reshape(B, S, KV)

    # --- flash-style attention + fused o_proj -------------------------------
    tq_eff = min(tq, S)
    if S % tq_eff != 0:
        tq_eff = S   # TODO(synk): pad + key-mask ragged sequence lengths for odd S
    tkv_eff = min(tkv, S)
    if S % tkv_eff != 0:
        tkv_eff = S

    attn_bytes = int(3 * B * S * E * x.dtype.itemsize
                     + B * wo_t.size * wo_t.dtype.itemsize
                     + B * S * E * x.dtype.itemsize)
    out = pl.pallas_call(
        _attn_oproj_kernel,
        out_shape=jax.ShapeDtypeStruct((B, S, E), x.dtype),
        grid_spec=pltpu.PrefetchScalarGridSpec(
            num_scalar_prefetch=0,
            grid=(B, S // tq_eff, S // tkv_eff),
            in_specs=[
                pl.BlockSpec((None, tq_eff, E), lambda b, qi, ki: (b, qi, 0)),
                pl.BlockSpec((None, tkv_eff, E), lambda b, qi, ki: (b, ki, 0)),
                pl.BlockSpec((None, tkv_eff, E), lambda b, qi, ki: (b, ki, 0)),
                pl.BlockSpec((E, E), lambda b, qi, ki: (0, 0)),          # o_proj weight
            ],
            out_specs=pl.BlockSpec((None, tq_eff, E), lambda b, qi, ki: (b, qi, 0)),
            scratch_shapes=[
                pltpu.VMEM((tq_eff, 1), jnp.float32),    # running max
                pltpu.VMEM((tq_eff, 1), jnp.float32),    # running denom
                pltpu.VMEM((tq_eff, E), jnp.float32),    # output accumulator
            ],
        ),
        compiler_params=pltpu.CompilerParams(
            dimension_semantics=("parallel", "parallel", "arbitrary"),
            vmem_limit_bytes=64 * 1024 * 1024),
        cost_estimate=pl.CostEstimate(
            flops=int(4 * B * S * S * E + 2 * B * S * E * E),
            transcendentals=int(B * S * S),
            bytes_accessed=attn_bytes),
    )(q, k, v, wo_t)

    return out


# ---------------------------------------------------------------------------
# Pure-JAX reference (mirrors the PyTorch module, original feature order).
# ---------------------------------------------------------------------------
def _rope_ref(t, num_heads, head_dim, base=10000.0):
    B, S, D = t.shape
    inv_freq = 1.0 / (base ** (jnp.arange(0, head_dim, 2, dtype=jnp.float32) / head_dim))
    pos = jnp.arange(S, dtype=jnp.float32)
    freqs = pos[:, None] * inv_freq[None, :]
    cos = jnp.concatenate([jnp.cos(freqs), jnp.cos(freqs)], axis=-1)   # (S, hd)
    sin = jnp.concatenate([jnp.sin(freqs), jnp.sin(freqs)], axis=-1)
    th = t.reshape(B, S, num_heads, head_dim)
    rot = jnp.concatenate([-th[..., head_dim // 2:], th[..., :head_dim // 2]], axis=-1)
    out = th * cos[None, :, None, :] + rot * sin[None, :, None, :]
    return out.reshape(B, S, D)


def _reference(x, wq, bq, wkv, bkv, wo, num_attn_heads, num_kv_heads):
    E = x.shape[-1]
    hd = E // num_attn_heads
    KV = num_kv_heads * hd
    scale = hd ** (-0.5)
    q = (x @ wq.T + bq) * scale
    kv = x @ wkv.T + bkv
    k, v = kv[..., :KV], kv[..., KV:]
    q = _rope_ref(q, num_attn_heads, hd)
    k = _rope_ref(k, num_kv_heads, hd)
    s = q @ jnp.swapaxes(k, -1, -2)
    p = jax.nn.softmax(s, axis=-1)
    return (p @ v) @ wo.T


if __name__ == "__main__":
    batch, seq, embed_dim = 2, 8, 32
    num_attn_heads = num_kv_heads = 4            # head_dim = 8; num_kv*hd == embed_dim
    head_dim = embed_dim // num_attn_heads
    kv_dim = num_kv_heads * head_dim

    key = jax.random.PRNGKey(0)
    kx, kq, kbq, kkv, kbkv, ko = jax.random.split(key, 6)

    x = jax.random.normal(kx, (batch, seq, embed_dim), jnp.float32)
    wq = jax.random.normal(kq, (embed_dim, embed_dim), jnp.float32) * 0.05
    bq = jax.random.normal(kbq, (embed_dim,), jnp.float32) * 0.05
    wkv = jax.random.normal(kkv, (2 * kv_dim, embed_dim), jnp.float32) * 0.05
    bkv = jax.random.normal(kbkv, (2 * kv_dim,), jnp.float32) * 0.05
    wo = jax.random.normal(ko, (embed_dim, embed_dim), jnp.float32) * 0.05

    # f32 correctness check.
    params = prepare_qwen2_attention_params(
        wq, bq, wkv, bkv, wo,
        num_attn_heads=num_attn_heads, num_kv_heads=num_kv_heads)
    out = jax.block_until_ready(qwen2_attention(x, params))
    ref = _reference(x, wq, bq, wkv, bkv, wo, num_attn_heads, num_kv_heads)
    assert out.shape == (batch, seq, embed_dim)
    assert jnp.allclose(out, ref, atol=1e-4, rtol=1e-4), (
        f"f32 mismatch, max abs err {float(jnp.max(jnp.abs(out - ref)))}")

    # bf16 smoke test of the full-rate MXU path (f32 accumulation inside).
    params_bf16 = prepare_qwen2_attention_params(
        wq, bq, wkv, bkv, wo, num_attn_heads=num_attn_heads,
        num_kv_heads=num_kv_heads, param_dtype=jnp.bfloat16)
    out_bf16 = jax.block_until_ready(
        qwen2_attention(x.astype(jnp.bfloat16), params_bf16))
    assert jnp.allclose(out_bf16.astype(jnp.float32), ref, atol=2e-2, rtol=5e-2), (
        f"bf16 mismatch, max abs err {float(jnp.max(jnp.abs(out_bf16.astype(jnp.float32) - ref)))}")

    print("KERNEL_OK")
</pallas_src>

<mosaic_0001>
module attributes {stable_mosaic.version = 11 : i64} {
  func.func @_qkv_rope_kernel(%arg0: i32, %arg1: i32, %arg2: memref<16x32xf32, #tpu.memory_space<vmem>>, %arg3: memref<32x96xf32, #tpu.memory_space<vmem>>, %arg4: memref<1x96xf32, #tpu.memory_space<vmem>>, %arg5: memref<16x32xf32, #tpu.memory_space<vmem>>, %arg6: memref<16x32xf32, #tpu.memory_space<vmem>>, %arg7: memref<16x32xf32, #tpu.memory_space<vmem>>, %arg8: memref<16x32xf32, #tpu.memory_space<vmem>>, %arg9: memref<16x32xf32, #tpu.memory_space<vmem>>, %arg10: memref<16x96xf32, #tpu.memory_space<vmem>>) attributes {dimension_semantics = [#tpu.dimension_semantics<parallel>, #tpu.dimension_semantics<arbitrary>], iteration_bounds = array<i64: 1, 1>, scalar_prefetch = 0 : i64, scratch_operands = 1 : i64, tpu.core_type = #tpu.core_type<tc>, window_params = [{transform_indices = @transform_0, window_bounds = array<i64: 16, 32>}, {transform_indices = @transform_1, window_bounds = array<i64: 32, 96>}, {pipeline_mode = #tpu.pipeline_mode<synchronous>, transform_indices = @transform_2, window_bounds = array<i64: 1, 96>}, {transform_indices = @transform_3, window_bounds = array<i64: 16, 32>}, {transform_indices = @transform_4, window_bounds = array<i64: 16, 32>}, {transform_indices = @transform_5, window_bounds = array<i64: 16, 32>}, {transform_indices = @transform_6, window_bounds = array<i64: 16, 32>}, {transform_indices = @transform_7, window_bounds = array<i64: 16, 32>}]} {
    %c0_i32 = arith.constant 0 : i32
    %0 = arith.cmpi eq, %arg1, %c0_i32 : i32
    %1 = arith.extui %0 : i1 to i32
    %c0_i32_0 = arith.constant 0 : i32
    %2 = arith.cmpi ne, %1, %c0_i32_0 : i32
    scf.if %2 {
      %cst_10 = arith.constant 0.000000e+00 : f32
      %12 = vector.broadcast %cst_10 : f32 to vector<16x96xf32>
      %c0_11 = arith.constant 0 : index
      %c0_12 = arith.constant 0 : index
      %13 = vector.load %arg10[%c0_11, %c0_12] : memref<16x96xf32, #tpu.memory_space<vmem>>, vector<16x96xf32>
      tpu.vector_store %arg10[%c0_11, %c0_12], %12 {strides = array<i32>} : memref<16x96xf32, #tpu.memory_space<vmem>>, vector<16x96xf32>,
    } else {
    }
    %c0 = arith.constant 0 : index
    %c0_1 = arith.constant 0 : index
    %3 = vector.load %arg10[%c0, %c0_1] : memref<16x96xf32, #tpu.memory_space<vmem>>, vector<16x96xf32>
    %c0_2 = arith.constant 0 : index
    %c0_3 = arith.constant 0 : index
    %4 = vector.load %arg2[%c0_2, %c0_3] : memref<16x32xf32, #tpu.memory_space<vmem>>, vector<16x32xf32>
    %c0_4 = arith.constant 0 : index
    %c0_5 = arith.constant 0 : index
    %5 = vector.load %arg3[%c0_4, %c0_5] : memref<32x96xf32, #tpu.memory_space<vmem>>, vector<32x96xf32>
    %cst = arith.constant dense<0.000000e+00> : vector<16x96xf32>
    %6 = tpu.matmul %4, %5, %cst {dimension_numbers = #tpu.dot_dimension_numbers<[1], [0], [0], [1], [0, 0, 1, 1], [], []>} : vector<16x32xf32>, vector<32x96xf32>, vector<16x96xf32> -> vector<16x96xf32>
    %7 = arith.addf %3, %6 : vector<16x96xf32>
    %c0_6 = arith.constant 0 : index
    %c0_7 = arith.constant 0 : index
    %8 = vector.load %arg10[%c0_6, %c0_7] : memref<16x96xf32, #tpu.memory_space<vmem>>, vector<16x96xf32>
    tpu.vector_store %arg10[%c0_6, %c0_7], %7 {strides = array<i32>} : memref<16x96xf32, #tpu.memory_space<vmem>>, vector<16x96xf32>,
    %c0_i32_8 = arith.constant 0 : i32
    %9 = arith.cmpi eq, %arg1, %c0_i32_8 : i32
    %10 = arith.extui %9 : i1 to i32
    %c0_i32_9 = arith.constant 0 : i32
    %11 = arith.cmpi ne, %10, %c0_i32_9 : i32
    scf.if %11 {
      %c0_10 = arith.constant 0 : index
      %c0_11 = arith.constant 0 : index
      %12 = vector.load %arg10[%c0_10, %c0_11] : memref<16x96xf32, #tpu.memory_space<vmem>>, vector<16x96xf32>
      %c0_12 = arith.constant 0 : index
      %c0_13 = arith.constant 0 : index
      %13 = vector.load %arg4[%c0_12, %c0_13] : memref<1x96xf32, #tpu.memory_space<vmem>>, vector<1x96xf32>
      %14 = vector.broadcast %13 : vector<1x96xf32> to vector<16x96xf32>
      %15 = arith.addf %12, %14 : vector<16x96xf32>
      %c0_14 = arith.constant 0 : index
      %c0_15 = arith.constant 0 : index
      %16 = vector.load %arg5[%c0_14, %c0_15] : memref<16x32xf32, #tpu.memory_space<vmem>>, vector<16x32xf32>
      %c0_16 = arith.constant 0 : index
      %c0_17 = arith.constant 0 : index
      %17 = vector.load %arg6[%c0_16, %c0_17] : memref<16x32xf32, #tpu.memory_space<vmem>>, vector<16x32xf32>
      %18 = vector.extract_strided_slice %15 {offsets = [0, 0], sizes = [16, 32], strides = [1, 1]} : vector<16x96xf32> to vector<16x32xf32>
      %19 = vector.extract_strided_slice %18 {offsets = [0, 16], sizes = [16, 16], strides = [1, 1]} : vector<16x32xf32> to vector<16x16xf32>
      %cst_18 = arith.constant 0.000000e+00 : f32
      %20 = vector.broadcast %cst_18 : f32 to vector<16x16xf32>
      %21 = arith.subf %20, %19 : vector<16x16xf32>
      %22 = vector.extract_strided_slice %18 {offsets = [0, 0], sizes = [16, 16], strides = [1, 1]} : vector<16x32xf32> to vector<16x16xf32>
      %23 = tpu.concatenate %21, %22 in 1 : vector<16x16xf32>, vector<16x16xf32> -> vector<16x32xf32>
      %24 = arith.mulf %18, %16 : vector<16x32xf32>
      %25 = arith.mulf %23, %17 : vector<16x32xf32>
      %26 = arith.addf %24, %25 : vector<16x32xf32>
      %c0_19 = arith.constant 0 : index
      %c0_20 = arith.constant 0 : index
      %27 = vector.load %arg7[%c0_19, %c0_20] : memref<16x32xf32, #tpu.memory_space<vmem>>, vector<16x32xf32>
      tpu.vector_store %arg7[%c0_19, %c0_20], %26 {strides = array<i32>} : memref<16x32xf32, #tpu.memory_space<vmem>>, vector<16x32xf32>,
      %28 = vector.extract_strided_slice %15 {offsets = [0, 32], sizes = [16, 32], strides = [1, 1]} : vector<16x96xf32> to vector<16x32xf32>
      %29 = vector.extract_strided_slice %28 {offsets = [0, 16], sizes = [16, 16], strides = [1, 1]} : vector<16x32xf32> to vector<16x16xf32>
      %cst_21 = arith.constant 0.000000e+00 : f32
      %30 = vector.broadcast %cst_21 : f32 to vector<16x16xf32>
      %31 = arith.subf %30, %29 : vector<16x16xf32>
      %32 = vector.extract_strided_slice %28 {offsets = [0, 0], sizes = [16, 16], strides = [1, 1]} : vector<16x32xf32> to vector<16x16xf32>
      %33 = tpu.concatenate %31, %32 in 1 : vector<16x16xf32>, vector<16x16xf32> -> vector<16x32xf32>
      %34 = arith.mulf %28, %16 : vector<16x32xf32>
      %35 = arith.mulf %33, %17 : vector<16x32xf32>
      %36 = arith.addf %34, %35 : vector<16x32xf32>
      %c0_22 = arith.constant 0 : index
      %c0_23 = arith.constant 0 : index
      %37 = vector.load %arg8[%c0_22, %c0_23] : memref<16x32xf32, #tpu.memory_space<vmem>>, vector<16x32xf32>
      tpu.vector_store %arg8[%c0_22, %c0_23], %36 {strides = array<i32>} : memref<16x32xf32, #tpu.memory_space<vmem>>, vector<16x32xf32>,
      %38 = vector.extract_strided_slice %15 {offsets = [0, 64], sizes = [16, 32], strides = [1, 1]} : vector<16x96xf32> to vector<16x32xf32>
      %c0_24 = arith.constant 0 : index
      %c0_25 = arith.constant 0 : index
      %39 = vector.load %arg9[%c0_24, %c0_25] : memref<16x32xf32, #tpu.memory_space<vmem>>, vector<16x32xf32>
      tpu.vector_store %arg9[%c0_24, %c0_25], %38 {strides = array<i32>} : memref<16x32xf32, #tpu.memory_space<vmem>>, vector<16x32xf32>,
    } else {
    }
    return
  }
  func.func @transform_0(%arg0: i32, %arg1: i32) -> (i32, i32) {
    %c0_i32 = arith.constant 0 : i32
    return %arg0, %arg1 : i32, i32
  }
  func.func @transform_1(%arg0: i32, %arg1: i32) -> (i32, i32) {
    %c0_i32 = arith.constant 0 : i32
    %c0_i32_0 = arith.constant 0 : i32
    return %arg1, %c0_i32 : i32, i32
  }
  func.func @transform_2(%arg0: i32, %arg1: i32) -> (i32, i32) {
    %c0_i32 = arith.constant 0 : i32
    %c0_i32_0 = arith.constant 0 : i32
    %c0_i32_1 = arith.constant 0 : i32
    return %c0_i32, %c0_i32_0 : i32, i32
  }
  func.func @transform_3(%arg0: i32, %arg1: i32) -> (i32, i32) {
    %c0_i32 = arith.constant 0 : i32
    %c0_i32_0 = arith.constant 0 : i32
    return %arg0, %c0_i32 : i32, i32
  }
  func.func @transform_4(%arg0: i32, %arg1: i32) -> (i32, i32) {
    %c0_i32 = arith.constant 0 : i32
    %c0_i32_0 = arith.constant 0 : i32
    return %arg0, %c0_i32 : i32, i32
  }
  func.func @transform_5(%arg0: i32, %arg1: i32) -> (i32, i32) {
    %c0_i32 = arith.constant 0 : i32
    %c0_i32_0 = arith.constant 0 : i32
    return %arg0, %c0_i32 : i32, i32
  }
  func.func @transform_6(%arg0: i32, %arg1: i32) -> (i32, i32) {
    %c0_i32 = arith.constant 0 : i32
    %c0_i32_0 = arith.constant 0 : i32
    return %arg0, %c0_i32 : i32, i32
  }
  func.func @transform_7(%arg0: i32, %arg1: i32) -> (i32, i32) {
    %c0_i32 = arith.constant 0 : i32
    %c0_i32_0 = arith.constant 0 : i32
    return %arg0, %c0_i32 : i32, i32
  }
}

</mosaic_0001>

<bundles_post_ra>
// kernel: tpu_custom_call.1
= control target key start
LH: loop header
LB: loop body
LE: loop exit
PB: predicated region body
PF: predicated region fallthrough
CT: control target
= control target key end

     0   :  { %13 = vsyncpa [#allocation4], 0  ;;  %s776_s0 = inlined_call_operand.hbm [shape: f32[16,32], index: 0, kind: input, shape index: {}]   ;;  %s777_s1 = inlined_call_operand.hbm [shape: f32[32,96], index: 1, kind: input, shape index: {}]   ;;  %s778_s2 = inlined_call_operand.hbm [shape: f32[1,96], index: 2, kind: input, shape index: {}]   ;;  %s779_s3 = inlined_call_operand.hbm [shape: f32[16,32], index: 3, kind: input, shape index: {}]   ;;  %s780_s4 = inlined_call_operand.hbm [shape: f32[16,32], index: 4, kind: input, shape index: {}]   ;;  %s781_s5 = inlined_call_operand.hbm [shape: f32[16,32], index: 5, kind: output, shape index: {0}]   ;;  %s782_s6 = inlined_call_operand.hbm [shape: f32[16,32], index: 6, kind: output, shape index: {1}]   ;;  %s783_s7 = inlined_call_operand.hbm [shape: f32[16,32], index: 7, kind: output, shape index: {2}]  }
   0x1   :  { %14 = vsyncpa [#allocation7], 0 }
   0x2   :  { %15 = vsyncpa [#allocation10], 0 }
   0x3   :  { %16 = vsyncpa [#allocation5], 0 }
   0x4   :  { %17 = vsyncpa [#allocation14], 0  ;;  %s575_s24 = smov [#allocation6]   ;;  %s576_s26 = smov [#allocation9]  }
   0x5   :  { %s35_s25 = sshll.u32 %s575_s24, 4  ;;  %s57_s27 = sshll.u32 %s576_s26, 4  ;;  %s36_s25 = int_to_ptr.vmem [resolvable:$true] %s35_s25  ;;  %s632_s27 = int_to_ptr.vmem [resolvable:$true] %s57_s27 }
   0x6   :  { %s389_s30 = scalar_lea.hbm %s777_s1, 512 }
   0x7   :  { %p390_p0 = scmp.ne.s32.totalorder %s777_s1, %s389_s30  ;;  %p393_p1 = scmp.lt.u32.totalorder %s389_s30, %s777_s1 }
   0x9   :  { %p395_p2 = pnand %p393_p1, %p390_p0 }
   0xb   :  { %398 = shalt.err (!%p395_p2)
}
   0xc   :  { %s399_s12 = scalar_lea.vmem %s36_s25, 512  ;;  %p404_p4 = scmp.lt.s32.totalorder %s36_s25, %s36_s25 }
   0xd   :  { %p400_p3 = scmp.ne.s32.totalorder %s36_s25, %s399_s12  ;;  %p405_p5 = scmp.lt.s32.totalorder %s399_s12, %s399_s12 }
   0xf   :  { %p406_p6 = por %p405_p5, %p404_p4 }
  0x11   :  { %p407_p7 = pnand %p406_p6, %p400_p3 }
  0x13   :  { %410 = shalt.err (!%p407_p7)
}
  0x14   :  { %s577_s13 = smov 128   ;;  %s578_s14 = smov 8  }
  0x15   :  { %41 = dma.hbm_to_vmem [thread:$0]  %s777_s1, 512, %s36_s25, [#allocation7], %s577_s13, %s577_s13, %s578_s14  }
  0x16   :  { %s411_s19 = scalar_lea.hbm %s779_s3, 256 }
  0x17   :  { %p412_p8 = scmp.ne.s32.totalorder %s779_s3, %s411_s19  ;;  %p415_p9 = scmp.lt.u32.totalorder %s411_s19, %s779_s3 }
  0x19   :  { %p417_p10 = pnand %p415_p9, %p412_p8 }
  0x1b   :  { %420 = shalt.err (!%p417_p10)
}
  0x1c   :  { %s421_s24 = scalar_lea.vmem %s632_s27, 256  ;;  %p426_p12 = scmp.lt.s32.totalorder %s632_s27, %s632_s27 }
  0x1d   :  { %p422_p11 = scmp.ne.s32.totalorder %s632_s27, %s421_s24  ;;  %p427_p13 = scmp.lt.s32.totalorder %s421_s24, %s421_s24 }
  0x1f   :  { %p428_p0 = por %p427_p13, %p426_p12 }
  0x21   :  { %p429_p1 = pnand %p428_p0, %p422_p11 }
  0x23   :  { %432 = shalt.err (!%p429_p1)
}
  0x24   :  { %63 = dma.hbm_to_vmem [thread:$0]  %s779_s3, 256, %s632_s27, [#allocation10], %s577_s13, %s577_s13, %s578_s14  }
  0x25   :  { %s579_s26 = smov [#allocation3]   ;;  %s580_s29 = smov [#allocation8]  }
  0x26   :  { %s23_s28 = sshll.u32 %s579_s26, 4  ;;  %s48_s30 = sshll.u32 %s580_s29, 4  ;;  %s24_s28 = int_to_ptr.vmem [resolvable:$true] %s23_s28  ;;  %s49_s30 = int_to_ptr.vmem [resolvable:$true] %s48_s30 }
  0x27   :  { %s433_s10 = scalar_lea.hbm %s776_s0, 256 }
  0x28   :  { %p434_p2 = scmp.ne.s32.totalorder %s776_s0, %s433_s10  ;;  %p437_p3 = scmp.lt.u32.totalorder %s433_s10, %s776_s0 }
  0x2a   :  { %p439_p4 = pnand %p437_p3, %p434_p2 }
  0x2c   :  { %442 = shalt.err (!%p439_p4)
}
  0x2d   :  { %s443_s3 = scalar_lea.vmem %s24_s28, 256  ;;  %p448_p6 = scmp.lt.s32.totalorder %s24_s28, %s24_s28 }
  0x2e   :  { %p444_p5 = scmp.ne.s32.totalorder %s24_s28, %s443_s3  ;;  %p449_p7 = scmp.lt.s32.totalorder %s443_s3, %s443_s3 }
  0x30   :  { %p450_p8 = por %p449_p7, %p448_p6 }
  0x32   :  { %p451_p9 = pnand %p450_p8, %p444_p5 }
  0x34   :  { %454 = shalt.err (!%p451_p9)
}
  0x35   :  { %29 = dma.hbm_to_vmem [thread:$0]  %s776_s0, 256, %s24_s28, [#allocation4], %s577_s13, %s577_s13, %s578_s14  }
  0x36   :  { %s455_s20 = scalar_lea.hbm %s778_s2, 16 }
  0x37   :  { %p456_p10 = scmp.ne.s32.totalorder %s778_s2, %s455_s20  ;;  %p459_p11 = scmp.lt.u32.totalorder %s455_s20, %s778_s2 }
  0x39   :  { %p461_p12 = pnand %p459_p11, %p456_p10 }
  0x3b   :  { %464 = shalt.err (!%p461_p12)
}
  0x3c   :  { %s465_s1 = scalar_lea.vmem %s49_s30, 16  ;;  %s469_s25 = scalar_lea.vmem %s49_s30, 32 }
  0x3d   :  { %p466_p13 = scmp.ne.s32.totalorder %s49_s30, %s465_s1  ;;  %p470_p0 = scmp.lt.s32.totalorder %s49_s30, %s49_s30 }
  0x3e   :  { %p471_p1 = scmp.lt.s32.totalorder %s469_s25, %s465_s1 }
  0x40   :  { %p472_p2 = por %p471_p1, %p470_p0 }
  0x42   :  { %p473_p3 = pnand %p472_p2, %p466_p13 }
  0x44   :  { %476 = shalt.err (!%p473_p3)
}
  0x45   :  { %51 = dma.hbm_to_vmem [thread:$0]  %s778_s2, 16, %s49_s30, [#allocation7]  }
  0x46   :  { %s581_s28 = smov [#allocation11]   ;;  %s477_s10 = scalar_lea.hbm %s780_s4, 256 }
  0x47   :  { %s69_s29 = sshll.u32 %s581_s28, 4  ;;  %p478_p4 = scmp.ne.s32.totalorder %s780_s4, %s477_s10  ;;  %s70_s29 = int_to_ptr.vmem [resolvable:$true] %s69_s29 }
  0x48   :  { %p481_p5 = scmp.lt.u32.totalorder %s477_s10, %s780_s4 }
  0x4a   :  { %p483_p6 = pnand %p481_p5, %p478_p4 }
  0x4c   :  { %486 = shalt.err (!%p483_p6)
}
  0x4d   :  { %s487_s3 = scalar_lea.vmem %s70_s29, 256  ;;  %p492_p8 = scmp.lt.s32.totalorder %s70_s29, %s70_s29 }
  0x4e   :  { %p488_p7 = scmp.ne.s32.totalorder %s70_s29, %s487_s3  ;;  %p493_p9 = scmp.lt.s32.totalorder %s487_s3, %s487_s3 }
  0x50   :  { %p494_p10 = por %p493_p9, %p492_p8 }
  0x52   :  { %p495_p11 = pnand %p494_p10, %p488_p7 }
  0x54   :  { %498 = shalt.err (!%p495_p11)
}
  0x55   :  { %75 = dma.hbm_to_vmem [thread:$0]  %s780_s4, 256, %s70_s29, [#allocation10], %s577_s13, %s577_s13, %s578_s14  }
  0x56   :  { %565 = dma.done.wait [#allocation4], 256  }
  0x57   :  { %566 = vsyncadd [#allocation4], 4294967040 }
  0x58   :  { %567 = dma.done.wait [#allocation7], 528  }
  0x59   :  { %568 = vsyncadd [#allocation7], 4294966768 }
  0x5a   :  { %569 = dma.done.wait [#allocation10], 512  }
  0x5b   :  { %570 = vsyncadd [#allocation10], 4294966784  ;;  %vm95_vm0 = vcmask 785408   ;;  %v582_v0 = vmov 0.0   ;;  %vm106_vm1 = vcmask 261120   ;;  %v102_v1 = vld [vmem:[#allocation6] sm:$0xff] }
  0x5c   :  { %97 = vst.msk [vmem:[#allocation2 + $0x8] sm:$0xff] %vm95_vm0, %v582_v0  ;;  %96 = vst.msk [vmem:[#allocation2] sm:$0xff] %vm95_vm0, %v582_v0  ;;  %v103_v2 = vld [vmem:[#allocation6 + $0x8] sm:$0xff]  ;;  %v104_v3 = vld [vmem:[#allocation6 + $0x10] sm:$0xff]  ;;  %s583_s4 = smov 112   ;;  %s584_s27 = smov 80  }
  0x5d   :  { %v364_v4 = vpack.c.bf16 %v103_v2, %v102_v1  ;;  %v105_v5 = vld [vmem:[#allocation6 + $0x18] sm:$0xff]  ;;  %v100_v6 = vld [vmem:[#allocation3] sm:$0xff]  ;;  %v346_v15 = vld [vmem:[#allocation8] ss:$0 sm:$0xff]  ;;  %s585_s17 = smov 32   ;;  %vm229_vm2 = vcmask 130048  }
  0x5e   :  { %v368_v7 = vpack.c.bf16 %v105_v5, %v104_v3  ;;  %361 = vmatprep.mubr.msk.f32.mxu0 %vm106_vm1, %v100_v6  ;;  %v101_v8 = vld [vmem:[#allocation3 + $0x8] sm:$0xff]  ;;  %v208_v22 = vld [vmem:[#allocation9 + $0x8] sm:$0xff]  ;;  %v207_v23 = vld [vmem:[#allocation9] sm:$0xff]  ;;  %s586_s18 = smov 16   ;;  %s587_s19 = smov 96  }
  0x5f   :  { %365 = vmatprep.subr.bf16.mxu0 %v364_v4  ;;  %v209_v25 = vld [vmem:[#allocation11] sm:$0xff]  ;;  %v210_v29 = vld [vmem:[#allocation11 + $0x8] sm:$0xff]  ;;  %s588_s20 = smov 64   ;;  %s589_s21 = smov [#allocation12]  }
  0x60   :  { %367 = vmatpush3.bf16.msra.mxu0 %v364_v4  ;;  %s299_s22 = sshll.u32 %s589_s21, 4  ;;  %s300_s22 = int_to_ptr.vmem [resolvable:$true] %s299_s22 }
  0x61   :  { %369 = vmatprep.subr.bf16.mxu0 %v368_v7  ;;  %s499_s23 = scalar_lea.vmem %s300_s22, 256  ;;  %p504_p13 = scmp.lt.s32.totalorder %s300_s22, %s300_s22 }
  0x62   :  { %p500_p12 = scmp.ne.s32.totalorder %s300_s22, %s499_s23  ;;  %p505_p0 = scmp.lt.s32.totalorder %s499_s23, %s499_s23 }
  0x63   :  { %v99_v9 = vld [vmem:[#allocation2 + $0x8] sm:$0xff]  ;;  %v98_v10 = vld [vmem:[#allocation2] sm:$0xff] }
  0x64   :  { %371 = vmatpush3.bf16.msra.mxu0 %v368_v7  ;;  %p506_p1 = por %p505_p0, %p504_p13 }
  0x66   :  { %p507_p2 = pnand %p506_p1, %p500_p12 }
  0x67   :  { %362 = vmatmul.mubr.msk.f32.vlgmr.msra.gmra.mrb[0].mxu0 %vm106_vm1, %v101_v8 }
 0x13a   :  { %v363_v11 = vpop.f32.mrb[0].mxu0 }
 0x13b   :  { %v189_v12 = vadd.f32 %v363_v11, %v99_v9  ;;  %v179_v13 = vpop.f32.mrb[1].mxu0 }
 0x13c   :  { %v188_v14 = vadd.f32 %v179_v13, %v98_v10 }
 0x13d   :  { %192 = vst.msk [vmem:[#allocation2 + $0x8] sm:$0xff] %vm95_vm0, %v189_v12 }
 0x13e   :  { %191 = vst.msk [vmem:[#allocation2] sm:$0xff] %vm95_vm0, %v188_v14 }
 0x144   :  { %v197_v17 = vld [vmem:[#allocation2 + $0x8] sm:$0xff] }
 0x145   :  { %v196_v16 = vld [vmem:[#allocation2] sm:$0xff]  ;;  %v206_v20 = vadd.f32 %v346_v15, %v197_v17 }
 0x146   :  { %v205_v18 = vadd.f32 %v346_v15, %v196_v16 }
 0x147   :  { %v212_v21 = vsub.f32 0.0, %v206_v20  ;;  %v233_v51 = vmul.f32 %v208_v22, %v206_v20 }
 0x148   :  { %246 = vrot.lane.b32.xlu1 %v205_v18, %s583_s4  ;;  %v211_v19 = vsub.f32 0.0, %v205_v18  ;;  %v232_v46 = vmul.f32 %v207_v23, %v205_v18 }
 0x14a   :  { %240 = vrot.lane.b32.xlu0 %v211_v19, %s584_s27 }
 0x14c   :  { %248 = vrot.lane.b32.xlu1 %v206_v20, %s583_s4 }
 0x14e   :  { %242 = vrot.lane.b32.xlu0 %v212_v21, %s584_s27 }
 0x150   :  { %258 = vrot.lane.b32.xlu1 %v208_v22, %s585_s17 }
 0x152   :  { %256 = vrot.lane.b32.xlu0 %v207_v23, %s585_s17 }
 0x1ba   :  { %v247_v24 = vpop.permute.xlu1 %246 }
 0x1bc   :  { %v241_v26 = vpop.permute.xlu0 %240 }
 0x1bd   :  { %v252_v27 = vsel %vm229_vm2, %v241_v26, %v247_v24 }
 0x1be   :  { %v264_v28 = vmul.f32 %v252_v27, %v209_v25  ;;  %v249_v30 = vpop.permute.xlu1 %248 }
 0x1c0   :  { %268 = vrot.lane.b32.xlu0 %v264_v28, %s585_s17  ;;  %v243_v31 = vpop.permute.xlu0 %242 }
 0x1c1   :  { %v253_v32 = vsel %vm229_vm2, %v243_v31, %v249_v30 }
 0x1c2   :  { %v265_v33 = vmul.f32 %v253_v32, %v210_v29  ;;  %v259_v36 = vpop.permute.xlu1 %258 }
 0x1c3   :  { %v263_v39 = vmul.f32 %v259_v36, %v206_v20 }
 0x1c4   :  { %215 = vrot.lane.b32.xlu0 %v211_v19, %s583_s4  ;;  %270 = vrot.lane.b32.xlu1 %v265_v33, %s585_s17  ;;  %v257_v34 = vpop.permute.xlu0 %256 }
 0x1c5   :  { %v262_v35 = vmul.f32 %v257_v34, %v205_v18 }
 0x1c8   :  { %223 = vrot.lane.b32.xlu0 %v205_v18, %s586_s18  ;;  %217 = vrot.lane.b32.xlu1 %v212_v21, %s583_s4 }
 0x1cc   :  { %225 = vrot.lane.b32.xlu1 %v206_v20, %s586_s18 }
 0x232   :  { %v269_v37 = vpop.permute.xlu0 %268 }
 0x233   :  { %v274_v38 = vadd.f32 %v269_v37, %v262_v35 }
 0x235   :  { %278 = vrot.lane.b32.xlu0 %v274_v38, %s587_s19 }
 0x236   :  { %v271_v40 = vpop.permute.xlu1 %270  ;;  %v216_v41 = vpop.permute.xlu0 %215 }
 0x237   :  { %v275_v42 = vadd.f32 %v271_v40, %v263_v39 }
 0x239   :  { %280 = vrot.lane.b32.xlu1 %v275_v42, %s587_s19  ;;  %286 = vrot.lane.b32.xlu0 %v205_v18, %s588_s20 }
 0x23a   :  { %v218_v43 = vpop.permute.xlu1 %217  ;;  %v224_v44 = vpop.permute.xlu0 %223 }
 0x23b   :  { %v230_v45 = vsel %vm229_vm2, %v216_v41, %v224_v44 }
 0x23c   :  { %v234_v47 = vmul.f32 %v230_v45, %v209_v25 }
 0x23d   :  { %288 = vrot.lane.b32.xlu1 %v206_v20, %s588_s20 }
 0x23e   :  { %v236_v48 = vadd.f32 %v234_v47, %v232_v46  ;;  %v226_v49 = vpop.permute.xlu1 %225 }
 0x23f   :  { %v231_v50 = vsel %vm229_vm2, %v218_v43, %v226_v49 }
 0x240   :  { %238 = vst.msk [vmem:[#allocation12] sm:$0xff] %vm106_vm1, %v236_v48  ;;  %v235_v52 = vmul.f32 %v231_v50, %v210_v29 }
 0x242   :  { %v237_v53 = vadd.f32 %v235_v52, %v233_v51 }
 0x244   :  { %239 = vst.msk [vmem:[#allocation12 + $0x8] sm:$0xff] %vm106_vm1, %v237_v53 }
 0x245   :  { %510 = shalt.err (!%p507_p2)
}
 0x246   :  { %s511_s25 = scalar_lea.hbm %s781_s5, 256 }
 0x247   :  { %p512_p3 = scmp.ne.s32.totalorder %s781_s5, %s511_s25  ;;  %p515_p4 = scmp.lt.u32.totalorder %s511_s25, %s781_s5 }
 0x249   :  { %p517_p5 = pnand %p515_p4, %p512_p3 }
 0x24b   :  { %520 = shalt.err (!%p517_p5)
}
 0x24c   :  { %305 = dma.vmem_to_hbm [thread:$0]  %s300_s22, 256, %s781_s5, [#allocation5], %s577_s13, %s577_s13, %s578_s14  }
 0x24d   :  { %s590_s10 = smov [#allocation13]   ;;  %s591_s12 = smov [#allocation15]  }
 0x24e   :  { %s311_s11 = sshll.u32 %s590_s10, 4  ;;  %s323_s15 = sshll.u32 %s591_s12, 4  ;;  %s312_s11 = int_to_ptr.vmem [resolvable:$true] %s311_s11  ;;  %s324_s15 = int_to_ptr.vmem [resolvable:$true] %s323_s15 }
 0x24f   :  { %s521_s16 = scalar_lea.vmem %s312_s11, 256  ;;  %p526_p7 = scmp.lt.s32.totalorder %s312_s11, %s312_s11 }
 0x250   :  { %p522_p6 = scmp.ne.s32.totalorder %s312_s11, %s521_s16  ;;  %p527_p8 = scmp.lt.s32.totalorder %s521_s16, %s521_s16 }
 0x252   :  { %p528_p9 = por %p527_p8, %p526_p7 }
 0x254   :  { %p529_p10 = pnand %p528_p9, %p522_p6 }
 0x2a7   :  { %v279_v54 = vpop.permute.xlu0 %278 }
 0x2a8   :  { %284 = vst.msk [vmem:[#allocation13] sm:$0xff] %vm106_vm1, %v279_v54 }
 0x2ab   :  { %v281_v55 = vpop.permute.xlu1 %280  ;;  %v287_v56 = vpop.permute.xlu0 %286 }
 0x2ac   :  { %285 = vst.msk [vmem:[#allocation13 + $0x8] sm:$0xff] %vm106_vm1, %v281_v55  ;;  %292 = vst.msk [vmem:[#allocation15] sm:$0xff] %vm106_vm1, %v287_v56 }
 0x2ad   :  { %532 = shalt.err (!%p529_p10)
}
 0x2ae   :  { %s533_s2 = scalar_lea.hbm %s782_s6, 256 }
 0x2af   :  { %p534_p11 = scmp.ne.s32.totalorder %s782_s6, %s533_s2  ;;  %p537_p12 = scmp.lt.u32.totalorder %s533_s2, %s782_s6 }
 0x2b1   :  { %p539_p13 = pnand %p537_p12, %p534_p11 }
 0x2b3   :  { %542 = shalt.err (!%p539_p13)
}
 0x2b4   :  { %317 = dma.vmem_to_hbm [thread:$0]  %s312_s11, 256, %s782_s6, [#allocation14], %s577_s13, %s577_s13, %s578_s14   ;;  %v289_v57 = vpop.permute.xlu1 %288 }
 0x2b5   :  { %293 = vst.msk [vmem:[#allocation15 + $0x8] sm:$0xff] %vm106_vm1, %v289_v57  ;;  %s543_s20 = scalar_lea.vmem %s324_s15, 256  ;;  %p548_p1 = scmp.lt.s32.totalorder %s324_s15, %s324_s15 }
 0x2b6   :  { %p544_p0 = scmp.ne.s32.totalorder %s324_s15, %s543_s20  ;;  %p549_p2 = scmp.lt.s32.totalorder %s543_s20, %s543_s20 }
 0x2b8   :  { %p550_p3 = por %p549_p2, %p548_p1 }
 0x2ba   :  { %p551_p4 = pnand %p550_p3, %p544_p0 }
 0x2bc   :  { %554 = shalt.err (!%p551_p4)
}
 0x2bd   :  { %s555_s23 = scalar_lea.hbm %s783_s7, 256 }
 0x2be   :  { %p556_p5 = scmp.ne.s32.totalorder %s783_s7, %s555_s23  ;;  %p559_p6 = scmp.lt.u32.totalorder %s555_s23, %s783_s7 }
 0x2c0   :  { %p561_p7 = pnand %p559_p6, %p556_p5 }
 0x2c2   :  { %564 = shalt.err (!%p561_p7)
}
 0x2c3   :  { %329 = dma.vmem_to_hbm [thread:$0]  %s324_s15, 256, %s783_s7, [#allocation14], %s577_s13, %s577_s13, %s578_s14  }
 0x2c4   :  { %571 = dma.done.wait [#allocation5], 256  }
 0x2c5   :  { %572 = vsyncadd [#allocation5], 4294967040 }
 0x2c6   :  { %573 = dma.done.wait [#allocation14], 512  }
 0x2c7   :  { %574 = vsyncadd [#allocation14], 4294966784 }
 0x2c8   :  { %339 = vsyncpa [#allocation4], 1 }
 0x2c9   :  { %340 = vsyncpa [#allocation7], 1 }
 0x2ca   :  { %341 = vsyncpa [#allocation10], 1 }
 0x2cb   :  { %342 = vsyncpa [#allocation5], 1 }
 0x2cc   :  { %343 = vsyncpa [#allocation14], 1 }

</bundles_post_ra>
